<compile_context>
chip_gen: v7x
topology: tpu7x:2x2x1
jax: 0.10.0
libtpu: 0.0.40
codegen_flags: <defaults>
</compile_context>

<pallas_src>
import functools
import math

import jax
import jax.numpy as jnp
from jax.experimental import pallas as pl
from jax.experimental.pallas import tpu as pltpu


def _round_up(x: int, m: int) -> int:
    return ((x + m - 1) // m) * m


def _cdiv(a: int, b: int) -> int:
    return (a + b - 1) // b


def _mlp_kernel(*refs, n_layers, relu_flags, out_pads, compute_dtype):
    """Fused MLP on one batch tile: h -> [h @ W (+b) (+ReLU)] * n_layers.

    refs = (x, w0, ..., w_{L-1}, bias_packed, out).  The layer loop is
    unrolled at trace time so activations never leave vregs/VMEM.
    """
    x_ref = refs[0]
    w_refs = refs[1:1 + n_layers]
    b_ref = refs[1 + n_layers]
    o_ref = refs[-1]

    h = x_ref[...]                                          # f32 activations
    for i in range(n_layers):                               # unrolled
        w = w_refs[i][...]                                  # compute_dtype
        acc = jnp.dot(h.astype(compute_dtype), w,
                      preferred_element_type=jnp.float32)   # MXU, f32 acc
        b = b_ref[i:i + 1, :out_pads[i]]                    # (1, N) f32 row
        h = acc + b                                          # VPU, f32
        if relu_flags[i]:
            h = jnp.maximum(h, 0.0)
    o_ref[...] = h.astype(o_ref.dtype)


def prepare_mlp(params, *, activate_final=False, batch_tile=256,
                param_dtype=jnp.bfloat16):
    """Pre-pads parameters once and returns (padded_args, jitted forward fn).

    params: list of (w_t:(in,out) f32, b:(1,out) f32) as produced by
    init_mlp_params (weights already transposed so y = x @ W_t + b matches
    F.linear(x, W, b)).
    """
    n_layers = len(params)
    in_size = int(params[0][0].shape[0])
    feat_sizes = [in_size] + [int(w.shape[1]) for (w, _) in params]
    feat_pads = [_round_up(s, 128) for s in feat_sizes]
    relu_flags = tuple((i < n_layers - 1) or activate_final
                       for i in range(n_layers))
    max_out_pad = max(feat_pads[1:])
    bias_rows = _round_up(n_layers, 8)
    out_size = feat_sizes[-1]
    out_pad = feat_pads[-1]

    # ---- one-time parameter padding (hoisted out of the forward pass) ----
    padded_ws = []
    bias_packed = jnp.zeros((bias_rows, max_out_pad), jnp.float32)
    for i, (w, b) in enumerate(params):
        w_p = jnp.zeros((feat_pads[i], feat_pads[i + 1]), param_dtype)
        w_p = w_p.at[: w.shape[0], : w.shape[1]].set(w.astype(param_dtype))
        padded_ws.append(w_p)
        bias_packed = bias_packed.at[i, : b.shape[-1]].set(
            b.reshape(-1).astype(jnp.float32))
    padded_args = tuple(padded_ws) + (bias_packed,)

    def forward(x, *padded):
        ws = padded[:n_layers]
        b_packed = padded[n_layers]
        B = x.shape[0]
        assert x.shape[1] == in_size, (x.shape, in_size)
        x = x.astype(jnp.float32)

        # ---- batch tiling: derive tile from tile count (bounds padding) ----
        n_tiles = max(1, _cdiv(B, batch_tile))
        if n_tiles == 1 and B > 8:
            n_tiles = 2            # v7x: give both TensorCores a tile
        tb = _round_up(_cdiv(B, n_tiles), 8)
        b_pad = n_tiles * tb

        if b_pad != B or feat_pads[0] != in_size:
            x_p = jnp.zeros((b_pad, feat_pads[0]), jnp.float32)
            x_p = x_p.at[:B, :in_size].set(x)
        else:
            x_p = x

        # ---- specs: x/out tiled over batch; params resident, single-buffered
        in_specs = [pl.BlockSpec((tb, feat_pads[0]), lambda i: (i, 0))]
        for li in range(n_layers):
            in_specs.append(pl.BlockSpec(
                (feat_pads[li], feat_pads[li + 1]), lambda i: (0, 0),
                pipeline_mode=pl.Buffered(1)))
        in_specs.append(pl.BlockSpec(
            (bias_rows, max_out_pad), lambda i: (0, 0),
            pipeline_mode=pl.Buffered(1)))
        out_spec = pl.BlockSpec((tb, out_pad), lambda i: (i, 0))

        # ---- cost & VMEM estimates ----
        flops = sum(2 * b_pad * feat_pads[i] * feat_pads[i + 1]
                    for i in range(n_layers))
        w_bytes = sum(int(w.size) * w.dtype.itemsize for w in ws)
        bytes_accessed = (4 * int(x_p.size) + w_bytes
                          + 4 * int(b_packed.size) + 4 * b_pad * out_pad)
        act_bytes = 4 * tb * max(feat_pads)
        vmem_est = (2 * 4 * tb * feat_pads[0]        # x, double-buffered
                    + 2 * 4 * tb * out_pad           # out, double-buffered
                    + w_bytes + 4 * int(b_packed.size)
                    + 2 * act_bytes)                 # activation headroom
        vmem_limit = int(min(max(32 << 20, vmem_est + (16 << 20)), 48 << 20))

        kernel = functools.partial(
            _mlp_kernel, n_layers=n_layers, relu_flags=relu_flags,
            out_pads=tuple(feat_pads[1:]), compute_dtype=param_dtype)

        out_p = pl.pallas_call(
            kernel,
            out_shape=jax.ShapeDtypeStruct((b_pad, out_pad), jnp.float32),
            grid_spec=pl.GridSpec(
                grid=(n_tiles,), in_specs=in_specs, out_specs=out_spec),
            compiler_params=pltpu.CompilerParams(
                dimension_semantics=("parallel",),
                vmem_limit_bytes=vmem_limit),
            cost_estimate=pl.CostEstimate(
                flops=flops, transcendentals=0,
                bytes_accessed=bytes_accessed),
        )(x_p, *padded)

        return out_p[:B, :out_size]

    return padded_args, jax.jit(forward)


def init_mlp_params(key, input_size, hidden_sizes, output_size):
    """Truncated-normal init matching SonnetLinear.reset().

    Weights are stored transposed as (in, out) so y = x @ W_t + b equals
    F.linear(x, W, b) with W of shape (out, in).
    """
    sizes = [input_size] + list(hidden_sizes) + [output_size]
    params = []
    for i in range(len(sizes) - 1):
        in_size, out_size = sizes[i], sizes[i + 1]
        key, sub = jax.random.split(key)
        stddev = 1.0 / math.sqrt(in_size)
        w = stddev * jax.random.truncated_normal(
            sub, -2.0, 2.0, (in_size, out_size), dtype=jnp.float32)
        b = jnp.zeros((1, out_size), dtype=jnp.float32)
        params.append((w, b))
    return params


if __name__ == "__main__":
    key = jax.random.PRNGKey(0)
    batch = 2
    input_size = 16
    hidden_sizes = [32, 32]
    output_size = 8

    k_x, k_p = jax.random.split(key)
    x = jax.random.normal(k_x, (batch, input_size), dtype=jnp.float32)
    params = init_mlp_params(k_p, input_size, hidden_sizes, output_size)

    # Pure-JAX reference of the same computation (unpadded, f32).
    ref = x
    for i, (w, b) in enumerate(params):
        ref = ref @ w + b
        if i < len(params) - 1:
            ref = jnp.maximum(ref, 0.0)

    # 1) f32 parameter path: exact check of the fused-kernel semantics.
    padded_f32, fwd_f32 = prepare_mlp(
        params, activate_final=False, param_dtype=jnp.float32)
    out_f32 = fwd_f32(x, *padded_f32)
    jax.block_until_ready(out_f32)
    assert out_f32.shape == (batch, output_size), out_f32.shape
    assert jnp.allclose(out_f32, ref, atol=1e-5, rtol=1e-5)

    # 2) bf16 fast path (default): MXU-native matmuls, f32 accumulation.
    padded_bf16, fwd_bf16 = prepare_mlp(params, activate_final=False)
    out_bf16 = fwd_bf16(x, *padded_bf16)
    jax.block_until_ready(out_bf16)
    assert out_bf16.shape == (batch, output_size), out_bf16.shape
    assert jnp.allclose(out_bf16, ref, atol=5e-2, rtol=5e-2)

    print("KERNEL_OK")
</pallas_src>

<mosaic_0001>
module attributes {stable_mosaic.version = 11 : i64} {
  func.func @_mlp_kernel(%arg0: i32, %arg1: memref<8x128xf32, #tpu.memory_space<vmem>>, %arg2: memref<128x128xf32, #tpu.memory_space<vmem>>, %arg3: memref<128x128xf32, #tpu.memory_space<vmem>>, %arg4: memref<128x128xf32, #tpu.memory_space<vmem>>, %arg5: memref<8x128xf32, #tpu.memory_space<vmem>>, %arg6: memref<8x128xf32, #tpu.memory_space<vmem>>) attributes {dimension_semantics = [#tpu.dimension_semantics<parallel>], iteration_bounds = array<i64: 1>, scalar_prefetch = 0 : i64, scratch_operands = 0 : i64, tpu.core_type = #tpu.core_type<tc>, window_params = [{transform_indices = @transform_0, window_bounds = array<i64: 8, 128>}, {pipeline_mode = #tpu.pipeline_mode<synchronous>, transform_indices = @transform_1, window_bounds = array<i64: 128, 128>}, {pipeline_mode = #tpu.pipeline_mode<synchronous>, transform_indices = @transform_2, window_bounds = array<i64: 128, 128>}, {pipeline_mode = #tpu.pipeline_mode<synchronous>, transform_indices = @transform_3, window_bounds = array<i64: 128, 128>}, {pipeline_mode = #tpu.pipeline_mode<synchronous>, transform_indices = @transform_4, window_bounds = array<i64: 8, 128>}, {transform_indices = @transform_5, window_bounds = array<i64: 8, 128>}]} {
    %c0 = arith.constant 0 : index
    %c0_0 = arith.constant 0 : index
    %0 = vector.load %arg1[%c0, %c0_0] : memref<8x128xf32, #tpu.memory_space<vmem>>, vector<8x128xf32>
    %c0_1 = arith.constant 0 : index
    %c0_2 = arith.constant 0 : index
    %1 = vector.load %arg2[%c0_1, %c0_2] : memref<128x128xf32, #tpu.memory_space<vmem>>, vector<128x128xf32>
    %cst = arith.constant dense<0.000000e+00> : vector<8x128xf32>
    %2 = tpu.matmul %0, %1, %cst {dimension_numbers = #tpu.dot_dimension_numbers<[1], [0], [0], [1], [0, 0, 1, 1], [], []>} : vector<8x128xf32>, vector<128x128xf32>, vector<8x128xf32> -> vector<8x128xf32>
    %c0_3 = arith.constant 0 : index
    %c0_4 = arith.constant 0 : index
    %3 = vector.load %arg5[%c0_3, %c0_4] : memref<8x128xf32, #tpu.memory_space<vmem>>, vector<1x128xf32>
    %4 = vector.broadcast %3 : vector<1x128xf32> to vector<8x128xf32>
    %5 = arith.addf %2, %4 : vector<8x128xf32>
    %cst_5 = arith.constant 0.000000e+00 : f32
    %6 = vector.broadcast %cst_5 : f32 to vector<8x128xf32>
    %7 = arith.maximumf %5, %6 : vector<8x128xf32>
    %c0_6 = arith.constant 0 : index
    %c0_7 = arith.constant 0 : index
    %8 = vector.load %arg3[%c0_6, %c0_7] : memref<128x128xf32, #tpu.memory_space<vmem>>, vector<128x128xf32>
    %cst_8 = arith.constant dense<0.000000e+00> : vector<8x128xf32>
    %9 = tpu.matmul %7, %8, %cst_8 {dimension_numbers = #tpu.dot_dimension_numbers<[1], [0], [0], [1], [0, 0, 1, 1], [], []>} : vector<8x128xf32>, vector<128x128xf32>, vector<8x128xf32> -> vector<8x128xf32>
    %c1 = arith.constant 1 : index
    %c0_9 = arith.constant 0 : index
    %10 = vector.load %arg5[%c1, %c0_9] : memref<8x128xf32, #tpu.memory_space<vmem>>, vector<1x128xf32>
    %11 = vector.broadcast %10 : vector<1x128xf32> to vector<8x128xf32>
    %12 = arith.addf %9, %11 : vector<8x128xf32>
    %cst_10 = arith.constant 0.000000e+00 : f32
    %13 = vector.broadcast %cst_10 : f32 to vector<8x128xf32>
    %14 = arith.maximumf %12, %13 : vector<8x128xf32>
    %c0_11 = arith.constant 0 : index
    %c0_12 = arith.constant 0 : index
    %15 = vector.load %arg4[%c0_11, %c0_12] : memref<128x128xf32, #tpu.memory_space<vmem>>, vector<128x128xf32>
    %cst_13 = arith.constant dense<0.000000e+00> : vector<8x128xf32>
    %16 = tpu.matmul %14, %15, %cst_13 {dimension_numbers = #tpu.dot_dimension_numbers<[1], [0], [0], [1], [0, 0, 1, 1], [], []>} : vector<8x128xf32>, vector<128x128xf32>, vector<8x128xf32> -> vector<8x128xf32>
    %c2 = arith.constant 2 : index
    %c0_14 = arith.constant 0 : index
    %17 = vector.load %arg5[%c2, %c0_14] : memref<8x128xf32, #tpu.memory_space<vmem>>, vector<1x128xf32>
    %18 = vector.broadcast %17 : vector<1x128xf32> to vector<8x128xf32>
    %19 = arith.addf %16, %18 : vector<8x128xf32>
    %c0_15 = arith.constant 0 : index
    %c0_16 = arith.constant 0 : index
    %20 = vector.load %arg6[%c0_15, %c0_16] : memref<8x128xf32, #tpu.memory_space<vmem>>, vector<8x128xf32>
    tpu.vector_store %arg6[%c0_15, %c0_16], %19 {strides = array<i32>} : memref<8x128xf32, #tpu.memory_space<vmem>>, vector<8x128xf32>,
    return
  }
  func.func @transform_0(%arg0: i32) -> (i32, i32) {
    %c0_i32 = arith.constant 0 : i32
    %c0_i32_0 = arith.constant 0 : i32
    return %arg0, %c0_i32 : i32, i32
  }
  func.func @transform_1(%arg0: i32) -> (i32, i32) {
    %c0_i32 = arith.constant 0 : i32
    %c0_i32_0 = arith.constant 0 : i32
    %c0_i32_1 = arith.constant 0 : i32
    return %c0_i32, %c0_i32_0 : i32, i32
  }
  func.func @transform_2(%arg0: i32) -> (i32, i32) {
    %c0_i32 = arith.constant 0 : i32
    %c0_i32_0 = arith.constant 0 : i32
    %c0_i32_1 = arith.constant 0 : i32
    return %c0_i32, %c0_i32_0 : i32, i32
  }
  func.func @transform_3(%arg0: i32) -> (i32, i32) {
    %c0_i32 = arith.constant 0 : i32
    %c0_i32_0 = arith.constant 0 : i32
    %c0_i32_1 = arith.constant 0 : i32
    return %c0_i32, %c0_i32_0 : i32, i32
  }
  func.func @transform_4(%arg0: i32) -> (i32, i32) {
    %c0_i32 = arith.constant 0 : i32
    %c0_i32_0 = arith.constant 0 : i32
    %c0_i32_1 = arith.constant 0 : i32
    return %c0_i32, %c0_i32_0 : i32, i32
  }
  func.func @transform_5(%arg0: i32) -> (i32, i32) {
    %c0_i32 = arith.constant 0 : i32
    %c0_i32_0 = arith.constant 0 : i32
    return %arg0, %c0_i32 : i32, i32
  }
}

</mosaic_0001>

<bundles_post_ra>
// kernel: forward.1
= control target key start
LH: loop header
LB: loop body
LE: loop exit
PB: predicated region body
PF: predicated region fallthrough
CT: control target
= control target key end

     0   :  { %10 = vsyncpa [#allocation3], 0  ;;  %s788_s0 = inlined_call_operand.vmem [shape: f32[8,128], index: 0, kind: input, shape index: {}]   ;;  %s789_s1 = inlined_call_operand.hbm [shape: f32[128,128], index: 1, kind: input, shape index: {}]   ;;  %s790_s2 = inlined_call_operand.hbm [shape: f32[128,128], index: 2, kind: input, shape index: {}]   ;;  %s791_s3 = inlined_call_operand.hbm [shape: f32[128,128], index: 3, kind: input, shape index: {}]   ;;  %s792_s4 = inlined_call_operand.vmem [shape: f32[8,128], index: 4, kind: input, shape index: {}]   ;;  %s793_s5 = inlined_call_operand.vmem [shape: f32[8,128], index: 5, kind: output, shape index: {}]  }
   0x1   :  { %11 = vsyncpa [#allocation5], 0  ;;  %s653_s18 = smov [#allocation4]   ;;  %s654_s20 = smov [#allocation2]  }
   0x2   :  { %s31_s19 = sshll.u32 %s653_s18, 4  ;;  %s19_s21 = sshll.u32 %s654_s20, 4  ;;  %s32_s19 = int_to_ptr.vmem [resolvable:$true] %s31_s19  ;;  %s691_s21 = int_to_ptr.vmem [resolvable:$true] %s19_s21 }
   0x3   :  { %s583_s24 = scalar_lea.hbm %s790_s2, 2048 }
   0x4   :  { %p584_p0 = scmp.ne.s32.totalorder %s790_s2, %s583_s24  ;;  %p587_p1 = scmp.lt.u32.totalorder %s583_s24, %s790_s2 }
   0x6   :  { %p589_p2 = pnand %p587_p1, %p584_p0 }
   0x8   :  { %592 = shalt.err (!%p589_p2)
}
   0x9   :  { %s593_s29 = scalar_lea.vmem %s32_s19, 2048  ;;  %p598_p4 = scmp.lt.s32.totalorder %s32_s19, %s32_s19 }
   0xa   :  { %p594_p3 = scmp.ne.s32.totalorder %s32_s19, %s593_s29  ;;  %p599_p5 = scmp.lt.s32.totalorder %s593_s29, %s593_s29 }
   0xc   :  { %p600_p6 = por %p599_p5, %p598_p4 }
   0xe   :  { %p601_p7 = pnand %p600_p6, %p594_p3 }
  0x10   :  { %604 = shalt.err (!%p601_p7)
}
  0x11   :  { %s655_s30 = smov 128   ;;  %s656_s6 = smov 8  }
  0x12   :  { %37 = dma.hbm_to_vmem [thread:$0]  %s790_s2, 2048, %s32_s19, [#allocation5], %s655_s30, %s655_s30, %s656_s6  }
  0x13   :  { %s605_s11 = scalar_lea.hbm %s789_s1, 2048 }
  0x14   :  { %p606_p8 = scmp.ne.s32.totalorder %s789_s1, %s605_s11  ;;  %p609_p9 = scmp.lt.u32.totalorder %s605_s11, %s789_s1 }
  0x16   :  { %p611_p10 = pnand %p609_p9, %p606_p8 }
  0x18   :  { %614 = shalt.err (!%p611_p10)
}
  0x19   :  { %s615_s16 = scalar_lea.vmem %s691_s21, 2048  ;;  %p620_p12 = scmp.lt.s32.totalorder %s691_s21, %s691_s21 }
  0x1a   :  { %p616_p11 = scmp.ne.s32.totalorder %s691_s21, %s615_s16  ;;  %p621_p13 = scmp.lt.s32.totalorder %s615_s16, %s615_s16 }
  0x1c   :  { %p622_p0 = por %p621_p13, %p620_p12 }
  0x1e   :  { %p623_p1 = pnand %p622_p0, %p616_p11 }
  0x20   :  { %626 = shalt.err (!%p623_p1)
}
  0x21   :  { %25 = dma.hbm_to_vmem [thread:$0]  %s789_s1, 2048, %s691_s21, [#allocation3], %s655_s30, %s655_s30, %s656_s6  }
  0x22   :  { %s657_s18 = smov [#allocation6]   ;;  %s627_s23 = scalar_lea.hbm %s791_s3, 2048 }
  0x23   :  { %s43_s19 = sshll.u32 %s657_s18, 4  ;;  %p628_p2 = scmp.ne.s32.totalorder %s791_s3, %s627_s23  ;;  %s44_s19 = int_to_ptr.vmem [resolvable:$true] %s43_s19 }
  0x24   :  { %p631_p3 = scmp.lt.u32.totalorder %s627_s23, %s791_s3 }
  0x26   :  { %p633_p4 = pnand %p631_p3, %p628_p2 }
  0x28   :  { %636 = shalt.err (!%p633_p4)
}
  0x29   :  { %s637_s28 = scalar_lea.vmem %s44_s19, 2048  ;;  %p642_p6 = scmp.lt.s32.totalorder %s44_s19, %s44_s19 }
  0x2a   :  { %p638_p5 = scmp.ne.s32.totalorder %s44_s19, %s637_s28  ;;  %p643_p7 = scmp.lt.s32.totalorder %s637_s28, %s637_s28 }
  0x2c   :  { %p644_p8 = por %p643_p7, %p642_p6 }
  0x2e   :  { %p645_p9 = pnand %p644_p8, %p638_p5 }
  0x30   :  { %648 = shalt.err (!%p645_p9)
}
  0x31   :  { %49 = dma.hbm_to_vmem [thread:$0]  %s791_s3, 2048, %s44_s19, [#allocation5], %s655_s30, %s655_s30, %s656_s6  }
  0x32   :  { %649 = dma.done.wait [#allocation3], 2048  }
  0x33   :  { %650 = vsyncadd [#allocation3], 4294965248 }
  0x34   :  { %651 = dma.done.wait [#allocation5], 4096  }
  0x35   :  { %652 = vsyncadd [#allocation5], 4294963200  ;;  %v658_v0 = vmov 0.0|0.0   ;;  %vm659_vm0 = vmmov 0   ;;  %v660_v1 = vmov 0.0   ;;  %v62_v2 = vld [vmem:[#allocation2] sm:$0xff] }
  0x36   :  { %503 = vmatprep.subr.bf16.mxu0 %v658_v0  ;;  %430 = vmatprep.mubr.msk.f32.mxu0 %vm659_vm0, %v660_v1  ;;  %v63_v3 = vld [vmem:[#allocation2 + $0x8] sm:$0xff]  ;;  %v64_v4 = vld [vmem:[#allocation2 + $0x10] sm:$0xff]  ;;  %v65_v6 = vld [vmem:[#allocation2 + $0x18] sm:$0xff] }
  0x37   :  { %527 = vmatprep.subr.bf16.mxu1 %v658_v0  ;;  %465 = vmatprep.mubr.msk.f32.mxu1 %vm659_vm0, %v660_v1  ;;  %v504_v5 = vpack.c.bf16 %v63_v3, %v62_v2  ;;  %v507_v7 = vpack.c.bf16 %v65_v6, %v64_v4  ;;  %v66_v8 = vld [vmem:[#allocation2 + $0x20] sm:$0xff]  ;;  %v67_v9 = vld [vmem:[#allocation2 + $0x28] sm:$0xff]  ;;  %v156_v12 = vld [vmem:[#allocation4 + $0x10] sm:$0xff] }
  0x38   :  { %v154_v10 = vld [vmem:[#allocation4] sm:$0xff]  ;;  %v155_v11 = vld [vmem:[#allocation4 + $0x8] sm:$0xff]  ;;  %v157_v13 = vld [vmem:[#allocation4 + $0x18] sm:$0xff]  ;;  %v510_v14 = vpack.c.bf16 %v67_v9, %v66_v8 }
  0x39   :  { %505 = vmatpush3.bf16.msra.mxu0 %v504_v5  ;;  %v528_v15 = vpack.c.bf16 %v155_v11, %v154_v10  ;;  %v68_v16 = vld [vmem:[#allocation2 + $0x30] sm:$0xff]  ;;  %v69_v17 = vld [vmem:[#allocation2 + $0x38] sm:$0xff]  ;;  %v531_v18 = vpack.c.bf16 %v157_v13, %v156_v12  ;;  %v158_v19 = vld [vmem:[#allocation4 + $0x20] sm:$0xff] }
  0x3a   :  { %506 = vmatprep.subr.bf16.mxu0 %v658_v0  ;;  %v159_v20 = vld [vmem:[#allocation4 + $0x28] sm:$0xff]  ;;  %v513_v21 = vpack.c.bf16 %v69_v17, %v68_v16  ;;  %v70_v22 = vld [vmem:[#allocation2 + $0x40] sm:$0xff]  ;;  %v160_v25 = vld [vmem:[#allocation4 + $0x30] sm:$0xff] }
  0x3b   :  { %529 = vmatpush3.bf16.msra.mxu1 %v528_v15  ;;  %v71_v23 = vld [vmem:[#allocation2 + $0x48] sm:$0xff]  ;;  %v534_v24 = vpack.c.bf16 %v159_v20, %v158_v19  ;;  %v161_v26 = vld [vmem:[#allocation4 + $0x38] sm:$0xff]  ;;  %v72_v28 = vld [vmem:[#allocation2 + $0x50] sm:$0xff] }
  0x3c   :  { %530 = vmatprep.subr.bf16.mxu1 %v658_v0  ;;  %v516_v27 = vpack.c.bf16 %v71_v23, %v70_v22  ;;  %v73_v29 = vld [vmem:[#allocation2 + $0x58] sm:$0xff]  ;;  %v537_v30 = vpack.c.bf16 %v161_v26, %v160_v25  ;;  %v162_v31 = vld [vmem:[#allocation4 + $0x40] sm:$0xff]  ;;  %v163_v32 = vld [vmem:[#allocation4 + $0x48] sm:$0xff] }
  0x3d   :  { %508 = vmatpush3.bf16.msra.mxu0 %v507_v7  ;;  %v519_v33 = vpack.c.bf16 %v73_v29, %v72_v28  ;;  %v74_v34 = vld [vmem:[#allocation2 + $0x60] sm:$0xff]  ;;  %v75_v35 = vld [vmem:[#allocation2 + $0x68] sm:$0xff]  ;;  %v540_v36 = vpack.c.bf16 %v163_v32, %v162_v31  ;;  %v164_v37 = vld [vmem:[#allocation4 + $0x50] sm:$0xff] }
  0x3e   :  { %509 = vmatprep.subr.bf16.mxu0 %v658_v0  ;;  %v165_v38 = vld [vmem:[#allocation4 + $0x58] sm:$0xff]  ;;  %v522_v39 = vpack.c.bf16 %v75_v35, %v74_v34  ;;  %v76_v40 = vld [vmem:[#allocation2 + $0x70] sm:$0xff]  ;;  %v166_v43 = vld [vmem:[#allocation4 + $0x60] sm:$0xff] }
  0x3f   :  { %532 = vmatpush3.bf16.msra.mxu1 %v531_v18  ;;  %v77_v41 = vld [vmem:[#allocation2 + $0x78] sm:$0xff]  ;;  %v543_v42 = vpack.c.bf16 %v165_v38, %v164_v37  ;;  %v167_v44 = vld [vmem:[#allocation4 + $0x68] sm:$0xff]  ;;  %v168_v48 = vld [vmem:[#allocation4 + $0x70] sm:$0xff] }
  0x40   :  { %533 = vmatprep.subr.bf16.mxu1 %v658_v0  ;;  %v525_v45 = vpack.c.bf16 %v77_v41, %v76_v40  ;;  %v546_v46 = vpack.c.bf16 %v167_v44, %v166_v43  ;;  %v61_v47 = vld [vmem:[%s788_s0] sm:$0xff]  ;;  %v246_v51 = vld [vmem:[#allocation6] sm:$0xff]  ;;  %v247_v52 = vld [vmem:[#allocation6 + $0x8] sm:$0xff] }
  0x41   :  { %511 = vmatpush3.bf16.msra.mxu0 %v510_v14  ;;  %v169_v49 = vld [vmem:[#allocation4 + $0x78] sm:$0xff]  ;;  %v248_v53 = vld [vmem:[#allocation6 + $0x10] sm:$0xff]  ;;  %v552_v54 = vpack.c.bf16 %v247_v52, %v246_v51  ;;  %v250_v57 = vld [vmem:[#allocation6 + $0x20] sm:$0xff] }
  0x42   :  { %512 = vmatprep.subr.bf16.mxu0 %v658_v0  ;;  %v549_v50 = vpack.c.bf16 %v169_v49, %v168_v48  ;;  %v249_v55 = vld [vmem:[#allocation6 + $0x18] sm:$0xff]  ;;  %v251_v58 = vld [vmem:[#allocation6 + $0x28] sm:$0xff]  ;;  %v252_v60 = vld [vmem:[#allocation6 + $0x30] sm:$0xff] }
  0x43   :  { %535 = vmatpush3.bf16.msra.mxu1 %v534_v24  ;;  %v555_v56 = vpack.c.bf16 %v249_v55, %v248_v53  ;;  %v558_v59 = vpack.c.bf16 %v251_v58, %v250_v57  ;;  %v253_v61 = vld [vmem:[#allocation6 + $0x38] sm:$0xff]  ;;  %v254_v63 = vld [vmem:[#allocation6 + $0x40] sm:$0xff]  ;;  %v256_v3 = vld [vmem:[#allocation6 + $0x50] sm:$0xff] }
  0x44   :  { %536 = vmatprep.subr.bf16.mxu1 %v658_v0  ;;  %v561_v62 = vpack.c.bf16 %v253_v61, %v252_v60  ;;  %v257_v4 = vld [vmem:[#allocation6 + $0x58] sm:$0xff]  ;;  %v258_v6 = vld [vmem:[#allocation6 + $0x60] sm:$0xff]  ;;  %v259_v7 = vld [vmem:[#allocation6 + $0x68] sm:$0xff] }
  0x45   :  { %514 = vmatpush3.bf16.msra.mxu0 %v513_v21  ;;  %v567_v5 = vpack.c.bf16 %v257_v4, %v256_v3  ;;  %v570_v8 = vpack.c.bf16 %v259_v7, %v258_v6  ;;  %v344_v9 = vld [vmem:[%s792_s4] ss:$0 sm:$0xff]  ;;  %v260_v14 = vld [vmem:[#allocation6 + $0x70] sm:$0xff]  ;;  %v345_v17 = vld [vmem:[%s792_s4 + $0x1] ss:$0 sm:$0xff] }
  0x46   :  { %515 = vmatprep.subr.bf16.mxu0 %v658_v0  ;;  %v261_v15 = vld [vmem:[#allocation6 + $0x78] sm:$0xff] }
  0x47   :  { %538 = vmatpush3.bf16.msra.mxu1 %v537_v30  ;;  %v573_v16 = vpack.c.bf16 %v261_v15, %v260_v14  ;;  %v346_v21 = vld [vmem:[%s792_s4 + $0x2] ss:$0 sm:$0xff] }
  0x48   :  { %539 = vmatprep.subr.bf16.mxu1 %v658_v0 }
  0x49   :  { %517 = vmatpush3.bf16.msra.mxu0 %v516_v27 }
  0x4a   :  { %518 = vmatprep.subr.bf16.mxu0 %v658_v0 }
  0x4b   :  { %541 = vmatpush3.bf16.msra.mxu1 %v540_v36 }
  0x4c   :  { %542 = vmatprep.subr.bf16.mxu1 %v658_v0 }
  0x4d   :  { %520 = vmatpush3.bf16.msra.mxu0 %v519_v33 }
  0x4e   :  { %521 = vmatprep.subr.bf16.mxu0 %v658_v0 }
  0x4f   :  { %544 = vmatpush3.bf16.msra.mxu1 %v543_v42 }
  0x50   :  { %545 = vmatprep.subr.bf16.mxu1 %v658_v0 }
  0x51   :  { %523 = vmatpush3.bf16.msra.mxu0 %v522_v39 }
  0x52   :  { %524 = vmatprep.subr.bf16.mxu0 %v658_v0 }
  0x53   :  { %547 = vmatpush3.bf16.msra.mxu1 %v546_v46 }
  0x54   :  { %548 = vmatprep.subr.bf16.mxu1 %v658_v0 }
  0x55   :  { %526 = vmatpush3.bf16.msra.mxu0 %v525_v45 }
  0x56   :  { %551 = vmatprep.subr.bf16.mxu0 %v658_v0 }
  0x57   :  { %550 = vmatpush3.bf16.msra.mxu1 %v549_v50 }
  0x58   :  { %431 = vmatmul.mubr.f32.vlgmr.msra.gmra.mrb[0].mxu0 %v61_v47 }
  0x59   :  { %500 = vmatprep.mubr.msk.f32.mxu0 %vm659_vm0, %v660_v1  ;;  %553 = vmatpush3.bf16.msra.mxu0 %v552_v54  ;;  %v255_v1 = vld [vmem:[#allocation6 + $0x48] sm:$0xff] }
  0x5a   :  { %554 = vmatprep.subr.bf16.mxu0 %v658_v0  ;;  %v564_v2 = vpack.c.bf16 %v255_v1, %v254_v63 }
  0x5d   :  { %556 = vmatpush3.bf16.msra.mxu0 %v555_v56 }
  0x5e   :  { %557 = vmatprep.subr.bf16.mxu0 %v658_v0 }
  0x61   :  { %559 = vmatpush3.bf16.msra.mxu0 %v558_v59 }
  0x62   :  { %560 = vmatprep.subr.bf16.mxu0 %v658_v0 }
  0x65   :  { %562 = vmatpush3.bf16.msra.mxu0 %v561_v62 }
  0x66   :  { %563 = vmatprep.subr.bf16.mxu0 %v658_v0 }
  0x69   :  { %565 = vmatpush3.bf16.msra.mxu0 %v564_v2 }
  0x6a   :  { %566 = vmatprep.subr.bf16.mxu0 %v658_v0 }
  0x6d   :  { %568 = vmatpush3.bf16.msra.mxu0 %v567_v5 }
  0x6e   :  { %569 = vmatprep.subr.bf16.mxu0 %v658_v0 }
  0x71   :  { %571 = vmatpush3.bf16.msra.mxu0 %v570_v8 }
  0x72   :  { %572 = vmatprep.subr.bf16.mxu0 %v658_v0 }
  0x75   :  { %574 = vmatpush3.bf16.msra.mxu0 %v573_v16 }
 0x12b   :  { %v149_v10 = vpop.f32.mrb[0].mxu0 }
 0x12c   :  { %v150_v11 = vadd.f32 %v344_v9, %v149_v10  ;;  %v432_v12 = vpop.f32.mrb[1].mxu0 }
 0x12e   :  { %v153_v13 = vmax.f32 %v150_v11, 0.0 }
 0x130   :  { %466 = vmatmul.mubr.f32.vlgmr.msra.gmra.mrb[0].mxu1 %v153_v13 }
 0x203   :  { %v241_v18 = vpop.f32.mrb[0].mxu1 }
 0x204   :  { %v242_v19 = vadd.f32 %v345_v17, %v241_v18  ;;  %v467_v0 = vpop.f32.mrb[1].mxu1 }
 0x206   :  { %v245_v20 = vmax.f32 %v242_v19, 0.0 }
 0x208   :  { %501 = vmatmul.mubr.f32.vlgmr.msra.gmra.mrb[2].mxu0 %v245_v20 }
 0x2db   :  { %v333_v22 = vpop.f32.mrb[2].mxu0 }
 0x2dc   :  { %v334_v23 = vadd.f32 %v346_v21, %v333_v22  ;;  %v502_v24 = vpop.f32.mrb[3].mxu0 }
 0x2de   :  { %337 = vst [vmem:[%s793_s5] sm:$0xff] %v334_v23 }
 0x2df   :  { %342 = vsyncpa [#allocation3], 1 }
 0x2e0   :  { %343 = vsyncpa [#allocation5], 1 }

</bundles_post_ra>
